<compile_context>
chip_gen: v7x
topology: tpu7x:2x2x1
jax: 0.10.0
libtpu: 0.0.40
codegen_flags: <defaults>
</compile_context>

<pallas_src>
import functools

import jax
import jax.numpy as jnp
from jax import lax
from jax.experimental import pallas as pl
from jax.experimental.pallas import tpu as pltpu


def _round_up(x, m):
    return ((x + m - 1) // m) * m


def critic_kernel(x_ref, w1_ref, b1_ref, w2_ref, b2_ref, wl_ref, bl_ref, o_ref):
    # Layer 1: single fused matmul (obs|act concatenated in the wrapper, bf16).
    h1 = jnp.dot(x_ref[...], w1_ref[...], preferred_element_type=jnp.float32)
    h1 = jnp.maximum(h1 + b1_ref[...], 0.0)             # bias + ReLU in f32 (VPU)

    # Layer 2.
    h2 = jnp.dot(h1.astype(jnp.bfloat16), w2_ref[...],
                 preferred_element_type=jnp.float32)
    h2 = jnp.maximum(h2 + b2_ref[...], 0.0)             # (tb, hidden_p) f32

    # Value head on the MXU: contract the hidden (lane) axes of the (1,hidden_p)
    # head row against h2 -> already lane-dense (1, tb).  No XLU transpose of
    # h2, no N=1 matmul, no extra (tb, hidden_p) f32 temporary.
    v = lax.dot_general(wl_ref[...], h2.astype(jnp.bfloat16),
                        dimension_numbers=(((1,), (1,)), ((), ())),
                        preferred_element_type=jnp.float32)          # (1, tb)
    o_ref[...] = (v + bl_ref[0, 0]).astype(o_ref.dtype)              # b_last: SMEM scalar


@functools.partial(jax.jit, static_argnames=("tb",))
def critic_forward(obs, actions, params, *, tb=None):
    # Concat obs | flatten(actions) once in the wrapper and stream as bf16
    # (one aligned DMA stream, half the activation bytes; identical numerics
    # since the MXU inputs are bf16 anyway).
    act = actions.astype(jnp.float32).reshape(actions.shape[0], -1)   # flatten(1)
    x = jnp.concatenate([obs.astype(jnp.float32), act], axis=1).astype(jnp.bfloat16)
    B, in_dim = x.shape
    hidden_p = params["w2"].shape[0]         # already lane-padded (multiple of 128)

    # Batch tiling.
    if tb is None:
        if B <= 256:
            tb = _round_up(B, 8)             # single block: no pipeline overhead
        else:
            # >= 2 grid steps so v7x's two TensorCores both get work; 128-aligned
            # lane-dense output tiles.  Prefer a tb that divides B exactly so the
            # wrapper never pads.  On v5e/v6e (128 MiB VMEM) sweep tb up to
            # 1024-2048 via the explicit tb argument for large B.
            tb = min(512, _round_up(-(-B // 2), 128))
            if B % tb != 0:
                for cand in (512, 384, 256, 128):
                    if cand <= tb and B % cand == 0:
                        tb = cand
                        break
    tb = int(tb)
    num_tiles = -(-B // tb)
    Bp = num_tiles * tb
    if num_tiles > 1 and tb % 128 != 0:
        raise ValueError("multi-tile grids need tb % 128 == 0 "
                         "(lane-dense (1, tb) output blocks)")
    if Bp != B:
        x = jnp.pad(x, ((0, Bp - B), (0, 0)))

    const = lambda i: (0, 0)                          # resident weights / biases
    resident = dict(pipeline_mode=pl.Buffered(1))     # no double-buffering of constants

    # Rough VMEM budget; only override the default scoped limit when needed
    # (keeps v7x's 64 MiB physical ceiling in mind when hidden is scaled up).
    weight_bytes = (in_dim * hidden_p * 2 + hidden_p * hidden_p * 2
                    + 3 * hidden_p * 4 + hidden_p * 2)
    act_bytes = 2 * (tb * in_dim * 2 + tb * 4)        # double-buffered x / out tiles
    tmp_bytes = 2 * tb * hidden_p * 4                 # h1, h2 f32 temporaries
    vmem_est = weight_bytes + act_bytes + tmp_bytes
    compiler_kwargs = {}
    if vmem_est > 16 * 1024 * 1024:
        compiler_kwargs["vmem_limit_bytes"] = int(
            min(64 * 1024 * 1024, int(vmem_est * 1.25)))
        # TODO(synk): for hidden_p >= ~4096 tile the layer-2 contraction as an
        # extra grid axis (f32 accumulator + pl.when init/finalize) instead of
        # keeping W2 fully resident.

    out = pl.pallas_call(
        critic_kernel,
        out_shape=jax.ShapeDtypeStruct((1, Bp), jnp.float32),        # lane-dense row
        grid=(num_tiles,),
        in_specs=[
            pl.BlockSpec((tb, in_dim), lambda i: (i, 0)),            # x tile (bf16)
            pl.BlockSpec((in_dim, hidden_p), const, **resident),     # W1 (bf16)
            pl.BlockSpec((1, hidden_p), const, **resident),          # b1 (f32)
            pl.BlockSpec((hidden_p, hidden_p), const, **resident),   # W2 (bf16)
            pl.BlockSpec((1, hidden_p), const, **resident),          # b2 (f32)
            pl.BlockSpec((1, hidden_p), const, **resident),          # w_last row (bf16)
            pl.BlockSpec(memory_space=pltpu.MemorySpace.SMEM),       # b_last scalar
        ],
        out_specs=pl.BlockSpec((1, tb), lambda i: (0, i)),
        compiler_params=pltpu.CompilerParams(
            dimension_semantics=("parallel",), **compiler_kwargs),
    )(x, params["w1"], params["b1"], params["w2"], params["b2"],
      params["w_last"], params["b_last"])

    return out.reshape(Bp, 1)[:B]            # back to the module's (B, 1) shape


def init_params(key, obs_dim, act_dim, hidden):
    """Deterministic synthetic init mirroring the module: backbone linears
    ~U(-1/sqrt(fan_in), ..), value head ~U(-0.003, 0.003).  Hidden dim is
    zero-padded to a multiple of 128 lanes (bit-identical through ReLU and the
    zero-padded head row).  NOTE: on v6e/v7x a 256-aligned hidden_p improves
    MXU occupancy if hidden lands just above a 128 boundary."""
    in_dim = obs_dim + act_dim
    hidden_p = _round_up(hidden, 128)
    pad_h = hidden_p - hidden
    ks = jax.random.split(key, 6)
    lim1 = 1.0 / (in_dim ** 0.5)
    lim2 = 1.0 / (hidden ** 0.5)
    u = lambda k, shp, lo, hi: jax.random.uniform(k, shp, jnp.float32, lo, hi)

    w1 = u(ks[0], (in_dim, hidden), -lim1, lim1)
    b1 = u(ks[1], (1, hidden), -lim1, lim1)
    w2 = u(ks[2], (hidden, hidden), -lim2, lim2)
    b2 = u(ks[3], (1, hidden), -lim2, lim2)
    wl = u(ks[4], (1, hidden), -0.003, 0.003)      # head stored as a row (pre-T)
    bl = u(ks[5], (1, 1), -0.003, 0.003)

    return {
        # matmul weights stored in bf16 (MXU path); biases stay f32.
        "w1": jnp.pad(w1, ((0, 0), (0, pad_h))).astype(jnp.bfloat16),
        "b1": jnp.pad(b1, ((0, 0), (0, pad_h))),
        "w2": jnp.pad(w2, ((0, pad_h), (0, pad_h))).astype(jnp.bfloat16),
        "b2": jnp.pad(b2, ((0, 0), (0, pad_h))),
        "w_last": jnp.pad(wl, ((0, 0), (0, pad_h))).astype(jnp.bfloat16),  # (1, hidden_p)
        "b_last": bl,                                                       # (1, 1) -> SMEM
    }


def critic_ref(obs, actions, params):
    """Pure-JAX reference mirroring the PyTorch forward and the kernel's
    bf16-at-matmul-inputs / f32-accumulation numerics."""
    f32 = jnp.float32
    act = actions.astype(f32).reshape(actions.shape[0], -1)
    x = jnp.concatenate([obs.astype(f32), act], axis=1)
    xb = x.astype(jnp.bfloat16).astype(f32)
    h1 = jnp.maximum(xb @ params["w1"].astype(f32) + params["b1"], 0.0)
    h2 = jnp.maximum(h1.astype(jnp.bfloat16).astype(f32) @ params["w2"].astype(f32)
                     + params["b2"], 0.0)
    wl = params["w_last"].astype(f32)                 # (1, hidden_p)
    v = jnp.sum(h2.astype(jnp.bfloat16).astype(f32) * wl, axis=1, keepdims=True)
    return v + params["b_last"]


if __name__ == "__main__":
    key = jax.random.PRNGKey(0)
    k_obs, k_act, k_par = jax.random.split(key, 3)

    B, OBS_DIM, ACT_DIM, HIDDEN = 16, 24, 8, 32

    obs = jax.random.normal(k_obs, (B, OBS_DIM), jnp.float32)
    actions = jax.random.normal(k_act, (B, ACT_DIM), jnp.float32)
    params = init_params(k_par, OBS_DIM, ACT_DIM, HIDDEN)

    values = jax.block_until_ready(critic_forward(obs, actions, params))

    expected = critic_ref(obs, actions, params)
    assert values.shape == (B, 1), values.shape
    max_err = float(jnp.max(jnp.abs(values - expected)))
    assert jnp.allclose(values, expected, atol=1e-4, rtol=1e-4), max_err

    print("KERNEL_OK")
</pallas_src>

<mosaic_0001>
module attributes {stable_mosaic.version = 11 : i64} {
  func.func @critic_kernel(%arg0: i32, %arg1: memref<16x32xbf16, #tpu.memory_space<vmem>>, %arg2: memref<32x128xbf16, #tpu.memory_space<vmem>>, %arg3: memref<1x128xf32, #tpu.memory_space<vmem>>, %arg4: memref<128x128xbf16, #tpu.memory_space<vmem>>, %arg5: memref<1x128xf32, #tpu.memory_space<vmem>>, %arg6: memref<1x128xbf16, #tpu.memory_space<vmem>>, %arg7: memref<1x1xf32, #tpu.memory_space<smem>>, %arg8: memref<1x16xf32, #tpu.memory_space<vmem>>) attributes {dimension_semantics = [#tpu.dimension_semantics<parallel>], iteration_bounds = array<i64: 1>, scalar_prefetch = 0 : i64, scratch_operands = 0 : i64, tpu.core_type = #tpu.core_type<tc>, window_params = [{transform_indices = @transform_0, window_bounds = array<i64: 16, 32>}, {pipeline_mode = #tpu.pipeline_mode<synchronous>, transform_indices = @transform_1, window_bounds = array<i64: 32, 128>}, {pipeline_mode = #tpu.pipeline_mode<synchronous>, transform_indices = @transform_2, window_bounds = array<i64: 1, 128>}, {pipeline_mode = #tpu.pipeline_mode<synchronous>, transform_indices = @transform_3, window_bounds = array<i64: 128, 128>}, {pipeline_mode = #tpu.pipeline_mode<synchronous>, transform_indices = @transform_4, window_bounds = array<i64: 1, 128>}, {pipeline_mode = #tpu.pipeline_mode<synchronous>, transform_indices = @transform_5, window_bounds = array<i64: 1, 128>}, {transform_indices = @transform_6, window_bounds = array<i64: 1, 1>}, {transform_indices = @transform_7, window_bounds = array<i64: 1, 16>}]} {
    %c0 = arith.constant 0 : index
    %c0_0 = arith.constant 0 : index
    %0 = vector.load %arg1[%c0, %c0_0] : memref<16x32xbf16, #tpu.memory_space<vmem>>, vector<16x32xbf16>
    %c0_1 = arith.constant 0 : index
    %c0_2 = arith.constant 0 : index
    %1 = vector.load %arg2[%c0_1, %c0_2] : memref<32x128xbf16, #tpu.memory_space<vmem>>, vector<32x128xbf16>
    %cst = arith.constant dense<0.000000e+00> : vector<16x128xf32>
    %2 = tpu.matmul %0, %1, %cst {dimension_numbers = #tpu.dot_dimension_numbers<[1], [0], [0], [1], [0, 0, 1, 1], [], []>} : vector<16x32xbf16>, vector<32x128xbf16>, vector<16x128xf32> -> vector<16x128xf32>
    %c0_3 = arith.constant 0 : index
    %c0_4 = arith.constant 0 : index
    %3 = vector.load %arg3[%c0_3, %c0_4] : memref<1x128xf32, #tpu.memory_space<vmem>>, vector<1x128xf32>
    %4 = vector.broadcast %3 : vector<1x128xf32> to vector<16x128xf32>
    %5 = arith.addf %2, %4 : vector<16x128xf32>
    %cst_5 = arith.constant 0.000000e+00 : f32
    %6 = vector.broadcast %cst_5 : f32 to vector<16x128xf32>
    %7 = arith.maximumf %5, %6 : vector<16x128xf32>
    %8 = arith.truncf %7 : vector<16x128xf32> to vector<16x128xbf16>
    %c0_6 = arith.constant 0 : index
    %c0_7 = arith.constant 0 : index
    %9 = vector.load %arg4[%c0_6, %c0_7] : memref<128x128xbf16, #tpu.memory_space<vmem>>, vector<128x128xbf16>
    %cst_8 = arith.constant dense<0.000000e+00> : vector<16x128xf32>
    %10 = tpu.matmul %8, %9, %cst_8 {dimension_numbers = #tpu.dot_dimension_numbers<[1], [0], [0], [1], [0, 0, 1, 1], [], []>} : vector<16x128xbf16>, vector<128x128xbf16>, vector<16x128xf32> -> vector<16x128xf32>
    %c0_9 = arith.constant 0 : index
    %c0_10 = arith.constant 0 : index
    %11 = vector.load %arg5[%c0_9, %c0_10] : memref<1x128xf32, #tpu.memory_space<vmem>>, vector<1x128xf32>
    %12 = vector.broadcast %11 : vector<1x128xf32> to vector<16x128xf32>
    %13 = arith.addf %10, %12 : vector<16x128xf32>
    %cst_11 = arith.constant 0.000000e+00 : f32
    %14 = vector.broadcast %cst_11 : f32 to vector<16x128xf32>
    %15 = arith.maximumf %13, %14 : vector<16x128xf32>
    %c0_12 = arith.constant 0 : index
    %c0_13 = arith.constant 0 : index
    %16 = vector.load %arg6[%c0_12, %c0_13] : memref<1x128xbf16, #tpu.memory_space<vmem>>, vector<1x128xbf16>
    %17 = arith.truncf %15 : vector<16x128xf32> to vector<16x128xbf16>
    %cst_14 = arith.constant dense<0.000000e+00> : vector<1x16xf32>
    %18 = tpu.matmul %16, %17, %cst_14 {dimension_numbers = #tpu.dot_dimension_numbers<[1], [1], [0], [0], [0, 0, 1, 0], [], []>} : vector<1x128xbf16>, vector<16x128xbf16>, vector<1x16xf32> -> vector<1x16xf32>
    %c0_15 = arith.constant 0 : index
    %c0_16 = arith.constant 0 : index
    %19 = memref.load %arg7[%c0_15, %c0_16] : memref<1x1xf32, #tpu.memory_space<smem>>
    %20 = vector.broadcast %19 : f32 to vector<1x16xf32>
    %21 = arith.addf %18, %20 : vector<1x16xf32>
    %c0_17 = arith.constant 0 : index
    %c0_18 = arith.constant 0 : index
    %22 = vector.load %arg8[%c0_17, %c0_18] : memref<1x16xf32, #tpu.memory_space<vmem>>, vector<1x16xf32>
    tpu.vector_store %arg8[%c0_17, %c0_18], %21 {strides = array<i32>} : memref<1x16xf32, #tpu.memory_space<vmem>>, vector<1x16xf32>,
    return
  }
  func.func @transform_0(%arg0: i32) -> (i32, i32) {
    %c0_i32 = arith.constant 0 : i32
    %c0_i32_0 = arith.constant 0 : i32
    return %arg0, %c0_i32 : i32, i32
  }
  func.func @transform_1(%arg0: i32) -> (i32, i32) {
    %c0_i32 = arith.constant 0 : i32
    %c0_i32_0 = arith.constant 0 : i32
    %c0_i32_1 = arith.constant 0 : i32
    return %c0_i32, %c0_i32_0 : i32, i32
  }
  func.func @transform_2(%arg0: i32) -> (i32, i32) {
    %c0_i32 = arith.constant 0 : i32
    %c0_i32_0 = arith.constant 0 : i32
    %c0_i32_1 = arith.constant 0 : i32
    return %c0_i32, %c0_i32_0 : i32, i32
  }
  func.func @transform_3(%arg0: i32) -> (i32, i32) {
    %c0_i32 = arith.constant 0 : i32
    %c0_i32_0 = arith.constant 0 : i32
    %c0_i32_1 = arith.constant 0 : i32
    return %c0_i32, %c0_i32_0 : i32, i32
  }
  func.func @transform_4(%arg0: i32) -> (i32, i32) {
    %c0_i32 = arith.constant 0 : i32
    %c0_i32_0 = arith.constant 0 : i32
    %c0_i32_1 = arith.constant 0 : i32
    return %c0_i32, %c0_i32_0 : i32, i32
  }
  func.func @transform_5(%arg0: i32) -> (i32, i32) {
    %c0_i32 = arith.constant 0 : i32
    %c0_i32_0 = arith.constant 0 : i32
    %c0_i32_1 = arith.constant 0 : i32
    return %c0_i32, %c0_i32_0 : i32, i32
  }
  func.func @transform_6(%arg0: i32) -> (i32, i32) {
    %c0_i32 = arith.constant 0 : i32
    %c0_i32_0 = arith.constant 0 : i32
    %c0_i32_1 = arith.constant 0 : i32
    return %c0_i32, %c0_i32_0 : i32, i32
  }
  func.func @transform_7(%arg0: i32) -> (i32, i32) {
    %c0_i32 = arith.constant 0 : i32
    %c0_i32_0 = arith.constant 0 : i32
    return %c0_i32, %arg0 : i32, i32
  }
}

</mosaic_0001>

<bundles_post_ra>
// kernel: critic_forward.1
= control target key start
LH: loop header
LB: loop body
LE: loop exit
PB: predicated region body
PF: predicated region fallthrough
CT: control target
= control target key end

     0   :  { %13 = vsyncpa [#allocation4], 0  ;;  %s583_s0 = inlined_call_operand.vmem [shape: bf16[16,32], index: 0, kind: input, shape index: {}]   ;;  %s584_s1 = inlined_call_operand.hbm [shape: bf16[32,128], index: 1, kind: input, shape index: {}]   ;;  %s585_s2 = inlined_call_operand.vmem [shape: f32[1,128], index: 2, kind: input, shape index: {}]   ;;  %s586_s3 = inlined_call_operand.vmem [shape: bf16[128,128], index: 3, kind: input, shape index: {}]   ;;  %s587_s4 = inlined_call_operand.vmem [shape: f32[1,128], index: 4, kind: input, shape index: {}]   ;;  %s588_s5 = inlined_call_operand.hbm [shape: bf16[1,128], index: 5, kind: input, shape index: {}]   ;;  %s589_s6 = inlined_call_operand.<no memory space> [shape: f32[1,1], index: 6, kind: input, shape index: {}]   ;;  %s590_s7 = inlined_call_operand.hbm [shape: f32[1,16], index: 7, kind: output, shape index: {}]  }
   0x1   :  { %14 = vsyncpa [#allocation7], 0 }
   0x2   :  { %15 = vsyncpa [#allocation5], 0  ;;  %s461_s24 = smov [#allocation3]   ;;  %s389_s28 = scalar_lea.hbm %s584_s1, 256 }
   0x3   :  { %s23_s25 = sshll.u32 %s461_s24, 4  ;;  %p390_p0 = scmp.ne.s32.totalorder %s584_s1, %s389_s28  ;;  %s24_s25 = int_to_ptr.vmem [resolvable:$true] %s23_s25 }
   0x4   :  { %p393_p1 = scmp.lt.u32.totalorder %s389_s28, %s584_s1 }
   0x6   :  { %p395_p2 = pnand %p393_p1, %p390_p0 }
   0x8   :  { %398 = shalt.err (!%p395_p2)
}
   0x9   :  { %s399_s10 = scalar_lea.vmem %s24_s25, 256  ;;  %p404_p4 = scmp.lt.s32.totalorder %s24_s25, %s24_s25 }
   0xa   :  { %p400_p3 = scmp.ne.s32.totalorder %s24_s25, %s399_s10  ;;  %p405_p5 = scmp.lt.s32.totalorder %s399_s10, %s399_s10 }
   0xc   :  { %p406_p6 = por %p405_p5, %p404_p4 }
   0xe   :  { %p407_p7 = pnand %p406_p6, %p400_p3 }
  0x10   :  { %410 = shalt.err (!%p407_p7)
}
  0x11   :  { %s462_s11 = smov 64   ;;  %s463_s12 = smov 4  }
  0x12   :  { %29 = dma.hbm_to_vmem [thread:$0]  %s584_s1, 256, %s24_s25, [#allocation4], %s462_s11, %s462_s11, %s463_s12  }
  0x13   :  { %s464_s15 = smov [#allocation6]   ;;  %s411_s19 = scalar_lea.hbm %s588_s5, 16 }
  0x14   :  { %s42_s16 = sshll.u32 %s464_s15, 4  ;;  %p412_p8 = scmp.ne.s32.totalorder %s588_s5, %s411_s19  ;;  %s43_s16 = int_to_ptr.vmem [resolvable:$true] %s42_s16 }
  0x15   :  { %p415_p9 = scmp.lt.u32.totalorder %s411_s19, %s588_s5 }
  0x17   :  { %p417_p10 = pnand %p415_p9, %p412_p8 }
  0x19   :  { %420 = shalt.err (!%p417_p10)
}
  0x1a   :  { %s421_s24 = scalar_lea.vmem %s43_s16, 16  ;;  %s425_s1 = scalar_lea.vmem %s43_s16, 32 }
  0x1b   :  { %p422_p11 = scmp.ne.s32.totalorder %s43_s16, %s421_s24  ;;  %p426_p12 = scmp.lt.s32.totalorder %s43_s16, %s43_s16 }
  0x1c   :  { %p427_p13 = scmp.lt.s32.totalorder %s425_s1, %s421_s24 }
  0x1e   :  { %p428_p0 = por %p427_p13, %p426_p12 }
  0x20   :  { %p429_p1 = pnand %p428_p0, %p422_p11 }
  0x22   :  { %432 = shalt.err (!%p429_p1)
}
  0x23   :  { %45 = dma.hbm_to_vmem [thread:$0]  %s588_s5, 16, %s43_s16, [#allocation7]  }
  0x24   :  { %455 = dma.done.wait [#allocation4], 256  }
  0x25   :  { %456 = vsyncadd [#allocation4], 4294967040 }
  0x26   :  { %457 = dma.done.wait [#allocation7], 16  }
  0x27   :  { %458 = vsyncadd [#allocation7], 4294967280  ;;  %v465_v0 = vmov 0.0   ;;  %vm466_vm0 = vmmov 0   ;;  %v378_v1 = vld [vmem:[#allocation3] sm:$0xff]   ;;  %v379_v2 = vld [vmem:[#allocation3 + $0x8] sm:$0xff]   ;;  %v250_v33 = vstv %s589_s6 }
  0x28   :  { %337 = vmatprep.subr.bf16.mxu0 %v465_v0  ;;  %341 = vmatprep.mubr.msk.bf16.mxu0 %vm466_vm0, %v465_v0  ;;  %v381_v3 = vld [vmem:[%s586_s3] sm:$0xff]   ;;  %v382_v5 = vld [vmem:[%s586_s3 + $0x8] sm:$0xff]   ;;  %vm85_vm1 = vcmask 261120   ;;  %v383_v6 = vld [vmem:[%s586_s3 + $0x10] sm:$0xff]   ;;  %s467_s24 = smov [#allocation8]   ;;  %vm291_vm2 = vcmask 122880  }
  0x29   :  { %345 = vmatprep.subr.bf16.mxu1 %v465_v0  ;;  %361 = vmatprep.mubr.msk.bf16.mxu1 %vm466_vm0, %v465_v0  ;;  %v380_v4 = vld [vmem:[%s583_s0] sm:$0xff]   ;;  %v384_v7 = vld [vmem:[%s586_s3 + $0x18] sm:$0xff]   ;;  %v386_v9 = vld [vmem:[%s586_s3 + $0x28] sm:$0xff]   ;;  %s299_s1 = sshll.u32 %s467_s24, 4  ;;  %s300_s1 = int_to_ptr.vmem [resolvable:$true] %s299_s1 }
  0x2a   :  { %338 = vmatpush3.bf16.msra.mxu0 %v378_v1  ;;  %346 = vmatpush3.bf16.msra.mxu1 %v381_v3  ;;  %v385_v8 = vld [vmem:[%s586_s3 + $0x20] sm:$0xff]   ;;  %v387_v10 = vld [vmem:[%s586_s3 + $0x30] sm:$0xff]   ;;  %v388_v11 = vld [vmem:[%s586_s3 + $0x38] sm:$0xff]   ;;  %s437_s25 = scalar_lea.vmem %s300_s1, 32  ;;  %p438_p3 = scmp.lt.s32.totalorder %s300_s1, %s300_s1 }
  0x2b   :  { %339 = vmatprep.subr.bf16.mxu0 %v465_v0  ;;  %347 = vmatprep.subr.bf16.mxu1 %v465_v0  ;;  %v309_v12 = vld [vmem:[%s585_s2] ss:$0 sm:$0xff]  ;;  %v247_v32 = vld [vmem:[#allocation6] sm:$0x1] }
  0x2c   :  { %v314_v22 = vld [vmem:[%s587_s4] ss:$0 sm:$0xff]  ;;  %s433_s4 = scalar_lea.vmem %s300_s1, 16 }
  0x2d   :  { %p434_p2 = scmp.ne.s32.totalorder %s300_s1, %s433_s4  ;;  %p439_p4 = scmp.lt.s32.totalorder %s437_s25, %s433_s4 }
  0x2e   :  { %340 = vmatpush3.bf16.msra.mxu0 %v379_v2  ;;  %348 = vmatpush3.bf16.msra.mxu1 %v382_v5 }
  0x2f   :  { %365 = vmatprep.subr.bf16.mxu0 %v465_v0  ;;  %349 = vmatprep.subr.bf16.mxu1 %v465_v0  ;;  %p440_p5 = por %p439_p4, %p438_p3 }
  0x31   :  { %342 = vmatmul.mubr.msk.bf16.vlgmr.msra.gmra.mrb[0].mxu0 %vm85_vm1, %v380_v4  ;;  %p441_p6 = pnand %p440_p5, %p434_p2 }
  0x32   :  { %367 = vmatprep.mubr.msk.bf16.mxu0 %vm466_vm0, %v465_v0  ;;  %350 = vmatpush3.bf16.msra.mxu1 %v383_v6 }
  0x33   :  { %351 = vmatprep.subr.bf16.mxu1 %v465_v0 }
  0x36   :  { %352 = vmatpush3.bf16.msra.mxu1 %v384_v7 }
  0x37   :  { %353 = vmatprep.subr.bf16.mxu1 %v465_v0 }
  0x3a   :  { %354 = vmatpush3.bf16.msra.mxu1 %v385_v8 }
  0x3b   :  { %355 = vmatprep.subr.bf16.mxu1 %v465_v0 }
  0x3e   :  { %356 = vmatpush3.bf16.msra.mxu1 %v386_v9 }
  0x3f   :  { %357 = vmatprep.subr.bf16.mxu1 %v465_v0 }
  0x42   :  { %358 = vmatpush3.bf16.msra.mxu1 %v387_v10 }
  0x43   :  { %359 = vmatprep.subr.bf16.mxu1 %v465_v0 }
  0x46   :  { %360 = vmatpush3.bf16.msra.mxu1 %v388_v11 }
 0x104   :  { %v123_v13 = vpop.f32.mrb[0].mxu0 }
 0x105   :  { %v124_v14 = vadd.f32 %v309_v12, %v123_v13  ;;  %v343_v15 = vpop.f32.mrb[1].mxu0 }
 0x106   :  { %v126_v16 = vpop.f32.mrb[2].mxu0 }
 0x107   :  { %v127_v17 = vadd.f32 %v309_v12, %v126_v16  ;;  %v344_v18 = vpop.f32.mrb[3].mxu0  ;;  %v130_v19 = vmax.f32 %v124_v14, 0.0 }
 0x109   :  { %v131_v20 = vmax.f32 %v127_v17, 0.0 }
 0x10b   :  { %v132_v21 = vpack.c.bf16 %v131_v20, %v130_v19 }
 0x10d   :  { %362 = vmatmul.mubr.bf16.vlgmr.msra.gmra.mrb[0].mxu1 %v132_v21 }
 0x1e0   :  { %v238_v23 = vpop.f32.mrb[0].mxu1 }
 0x1e1   :  { %v239_v24 = vadd.f32 %v314_v22, %v238_v23  ;;  %v363_v25 = vpop.f32.mrb[1].mxu1 }
 0x1e2   :  { %v241_v26 = vpop.f32.mrb[2].mxu1 }
 0x1e3   :  { %v242_v27 = vadd.f32 %v314_v22, %v241_v26  ;;  %v364_v28 = vpop.f32.mrb[3].mxu1  ;;  %v245_v29 = vmax.f32 %v239_v24, 0.0 }
 0x1e5   :  { %v246_v30 = vmax.f32 %v242_v27, 0.0 }
 0x1e7   :  { %v248_v31 = vpack.c.bf16 %v246_v30, %v245_v29 }
 0x1e9   :  { %366 = vmatpush3.bf16.xpose.msra.mxu0 %v248_v31 }
 0x1f0   :  { %368 = vmatmul.mubr.bf16.vlgmr.msra.gmra.mrb[4].mxu0 %v247_v32 }
 0x2c3   :  { %v285_v34 = vpop.f32.mrb[4].mxu0 }
 0x2c4   :  { %v286_v35 = vadd.f32 %v285_v34, %v250_v33  ;;  %v369_v36 = vpop.f32.mrb[5].mxu0 }
 0x2c5   :  { %v288_v37 = vpop.f32.mrb[6].mxu0 }
 0x2c6   :  { %v370_v38 = vpop.f32.mrb[7].mxu0  ;;  %292 = vst.msk [vmem:[#allocation8] sm:$0x1] %vm291_vm2, %v286_v35 }
 0x2c7   :  { %444 = shalt.err (!%p441_p6)
}
 0x2c8   :  { %s445_s27 = scalar_lea.hbm %s590_s7, 16 }
 0x2c9   :  { %p446_p7 = scmp.ne.s32.totalorder %s590_s7, %s445_s27  ;;  %p449_p8 = scmp.lt.u32.totalorder %s445_s27, %s590_s7 }
 0x2cb   :  { %p451_p9 = pnand %p449_p8, %p446_p7 }
 0x2cd   :  { %454 = shalt.err (!%p451_p9)
}
 0x2ce   :  { %302 = dma.vmem_to_hbm [thread:$0]  %s300_s1, 16, %s590_s7, [#allocation5]  }
 0x2cf   :  { %459 = dma.done.wait [#allocation5], 16  }
 0x2d0   :  { %460 = vsyncadd [#allocation5], 4294967280 }
 0x2d1   :  { %306 = vsyncpa [#allocation4], 1 }
 0x2d2   :  { %307 = vsyncpa [#allocation7], 1 }
 0x2d3   :  { %308 = vsyncpa [#allocation5], 1 }

</bundles_post_ra>
